<compile_context>
chip_gen: v7x
topology: tpu7x:2x2x1
jax: 0.10.0
libtpu: 0.0.40
codegen_flags: <defaults>
</compile_context>

<pallas_src>
import functools

import jax
import jax.numpy as jnp
from jax import lax
from jax.experimental import pallas as pl
from jax.experimental.pallas import tpu as pltpu


def _round_up(x, m):
    return ((x + m - 1) // m) * m


def _proj_kernel(x_ref, w_ref, b_ref, o_ref):
    """One (1, C, tl) activation block x (C, E) weight -> (1, tl, E).

    The transpose(1, 2) of the PyTorch module is absorbed by contracting over
    dim 0 of both operands. The activation cast to the compute dtype (the
    weight's dtype) happens here, in VMEM, so x is read from HBM only once in
    its original dtype.
    """
    x = x_ref[0].astype(w_ref.dtype)                  # (C, tl)
    acc = lax.dot_general(
        x,
        w_ref[...],
        dimension_numbers=(((0,), (0,)), ((), ())),   # contract over C
        preferred_element_type=jnp.float32,
    )                                                 # (tl, E) f32
    acc = acc + b_ref[...]                            # (1, E) bias, f32
    o_ref[...] = acc[None, :, :].astype(o_ref.dtype)


def _choose_row_tile(B, L, C, E, x_itemsize, w_itemsize, out_itemsize,
                     max_tile=4096, vmem_budget=20 << 20):
    """Largest multiple-of-128 row tile under a double-buffered VMEM budget.

    Budget (~20 MiB) keeps the footprint comfortable even on v7x (64 MiB
    physical / 32 MiB scoped default). The tile is shrunk if the grid would
    end up with fewer than ~8 steps so the megacore split stays balanced.
    """
    fixed = 2 * C * E * w_itemsize + 2 * 8 * _round_up(E, 128) * 4  # w + bias
    per_row = 2 * C * x_itemsize + 2 * E * out_itemsize             # x + out
    tl = max(vmem_budget - fixed, per_row) // per_row
    tl = min(tl, max_tile, _round_up(L, 128))
    tl = max(128, (tl // 128) * 128)
    while tl > 128 and B * pl.cdiv(L, tl) < 8:
        tl = max(128, ((tl // 2) // 128) * 128)
    return tl


@functools.partial(jax.jit, static_argnames=("compute_dtype", "out_dtype"))
def mlp_forward(x_nchw, w_kc, b_e, *, compute_dtype=jnp.bfloat16, out_dtype=None):
    """Matches MLP.forward.

    x_nchw: (B, C, H, W)
    w_kc:   (C, E)  -- transposed nn.Linear weight (Linear stores (E, C))
    b_e:    (E,)
    returns (B, H*W, E) in `out_dtype` (defaults to x's dtype).
    """
    B, C, H, W = x_nchw.shape
    K, E = w_kc.shape
    assert K == C, (K, C)
    L = H * W
    out_dtype = x_nchw.dtype if out_dtype is None else out_dtype

    # flatten(2) is a free reshape; NO transpose, NO cast, NO padding here.
    x_bcl = x_nchw.reshape(B, C, L)
    w_p = w_kc.astype(compute_dtype)                  # tiny, resident in VMEM
    b_p = b_e.astype(jnp.float32).reshape(1, E)

    x_b = jnp.dtype(x_nchw.dtype).itemsize
    w_b = jnp.dtype(compute_dtype).itemsize
    o_b = jnp.dtype(out_dtype).itemsize

    tl = _choose_row_tile(B, L, C, E, x_b, w_b, o_b)
    grid = (B, pl.cdiv(L, tl))                        # boundary block is masked

    # Actual double-buffered VMEM footprint -> explicit scoped-VMEM limit.
    footprint = (2 * C * tl * x_b                     # x tiles
                 + 2 * tl * E * o_b                   # out tiles
                 + 2 * C * E * w_b                    # weight
                 + 2 * 8 * _round_up(E, 128) * 4)     # bias
    vmem_limit = min(max(int(footprint) + (2 << 20), 16 << 20), 100 << 20)

    flops = 2 * B * L * C * E
    bytes_accessed = (B * C * L * x_b                 # x (read once, in dtype)
                      + C * E * w_b                   # weight
                      + E * 4                         # bias
                      + B * L * E * o_b)              # output (dominant stream)

    y = pl.pallas_call(
        _proj_kernel,
        out_shape=jax.ShapeDtypeStruct((B, L, E), out_dtype),
        grid_spec=pltpu.PrefetchScalarGridSpec(
            num_scalar_prefetch=0,
            grid=grid,
            in_specs=[
                pl.BlockSpec((1, C, tl), lambda b, l: (b, 0, l)),   # activations
                pl.BlockSpec((C, E), lambda b, l: (0, 0)),          # resident weight
                pl.BlockSpec((1, E), lambda b, l: (0, 0)),          # bias
            ],
            out_specs=pl.BlockSpec((1, tl, E), lambda b, l: (b, l, 0)),
        ),
        compiler_params=pltpu.CompilerParams(
            dimension_semantics=("parallel", "parallel"),
            vmem_limit_bytes=vmem_limit,
        ),
        cost_estimate=pl.CostEstimate(
            flops=flops, transcendentals=0, bytes_accessed=bytes_accessed),
    )(x_bcl, w_p, b_p)

    return y


if __name__ == "__main__":
    # Small shapes consistent with the module: input_dim = C, embed_dim = E.
    B, C, H, W = 2, 32, 16, 16
    E = 64

    key = jax.random.PRNGKey(0)
    kx, kw, kb = jax.random.split(key, 3)

    x = jax.random.normal(kx, (B, C, H, W), dtype=jnp.float32)
    # Deterministic init mimicking nn.Linear's uniform(-1/sqrt(C), 1/sqrt(C)).
    bound = 1.0 / (C ** 0.5)
    w = jax.random.uniform(kw, (C, E), dtype=jnp.float32, minval=-bound, maxval=bound)
    b = jax.random.uniform(kb, (E,), dtype=jnp.float32, minval=-bound, maxval=bound)

    # Pure-JAX reference of the PyTorch forward.
    ref = jnp.transpose(x.reshape(B, C, H * W), (0, 2, 1)) @ w + b

    # 1) Full-precision path: tight check.
    out_f32 = mlp_forward(x, w, b, compute_dtype=jnp.float32)
    jax.block_until_ready(out_f32)
    assert out_f32.shape == (B, H * W, E), out_f32.shape
    assert jnp.allclose(out_f32, ref, atol=1e-5, rtol=1e-5)

    # 2) Default bf16-compute path (f32 output): compare against a reference
    #    computed on bf16-rounded inputs (only accumulation noise remains).
    out_bf16 = mlp_forward(x, w, b)
    jax.block_until_ready(out_bf16)
    assert out_bf16.shape == (B, H * W, E), out_bf16.shape
    x_r = x.astype(jnp.bfloat16).astype(jnp.float32)
    w_r = w.astype(jnp.bfloat16).astype(jnp.float32)
    ref_bf16 = jnp.transpose(x_r.reshape(B, C, H * W), (0, 2, 1)) @ w_r + b
    assert jnp.allclose(out_bf16, ref_bf16, atol=1e-2, rtol=1e-2)

    # 3) Non-tile-divisible L (H*W = 165): exercises the masked boundary block
    #    (no wrapper-side padding or slicing).
    H2, W2 = 15, 11
    x2 = jax.random.normal(kx, (B, C, H2, W2), dtype=jnp.float32)
    ref2 = jnp.transpose(x2.reshape(B, C, H2 * W2), (0, 2, 1)) @ w + b
    out2 = mlp_forward(x2, w, b, compute_dtype=jnp.float32)
    jax.block_until_ready(out2)
    assert out2.shape == (B, H2 * W2, E), out2.shape
    assert jnp.allclose(out2, ref2, atol=1e-5, rtol=1e-5)

    print("KERNEL_OK")
</pallas_src>

<mosaic_0001>
module attributes {stable_mosaic.version = 11 : i64} {
  func.func @_proj_kernel(%arg0: i32, %arg1: i32, %arg2: memref<1x32x128xf32, #tpu.memory_space<vmem>>, %arg3: memref<32x64xf32, #tpu.memory_space<vmem>>, %arg4: memref<1x64xf32, #tpu.memory_space<vmem>>, %arg5: memref<1x128x64xf32, #tpu.memory_space<vmem>>) attributes {dimension_semantics = [#tpu.dimension_semantics<parallel>, #tpu.dimension_semantics<parallel>], iteration_bounds = array<i64: 2, 2>, scalar_prefetch = 0 : i64, scratch_operands = 0 : i64, tpu.core_type = #tpu.core_type<tc>, window_params = [{transform_indices = @transform_0, window_bounds = array<i64: 1, 32, 128>}, {pipeline_mode = #tpu.pipeline_mode<synchronous>, transform_indices = @transform_1, window_bounds = array<i64: 32, 64>}, {pipeline_mode = #tpu.pipeline_mode<synchronous>, transform_indices = @transform_2, window_bounds = array<i64: 1, 64>}, {transform_indices = @transform_3, window_bounds = array<i64: 1, 128, 64>}]} {
    %c0 = arith.constant 0 : index
    %c0_0 = arith.constant 0 : index
    %c0_1 = arith.constant 0 : index
    %0 = vector.load %arg2[%c0, %c0_0, %c0_1] : memref<1x32x128xf32, #tpu.memory_space<vmem>>, vector<1x32x128xf32>
    %1 = vector.shape_cast %0 : vector<1x32x128xf32> to vector<32x128xf32>
    %c0_2 = arith.constant 0 : index
    %c0_3 = arith.constant 0 : index
    %2 = vector.load %arg3[%c0_2, %c0_3] : memref<32x64xf32, #tpu.memory_space<vmem>>, vector<32x64xf32>
    %cst = arith.constant dense<0.000000e+00> : vector<128x64xf32>
    %3 = tpu.matmul %1, %2, %cst {dimension_numbers = #tpu.dot_dimension_numbers<[0], [0], [1], [1], [0, 1, 1, 1], [], []>} : vector<32x128xf32>, vector<32x64xf32>, vector<128x64xf32> -> vector<128x64xf32>
    %c0_4 = arith.constant 0 : index
    %c0_5 = arith.constant 0 : index
    %4 = vector.load %arg4[%c0_4, %c0_5] : memref<1x64xf32, #tpu.memory_space<vmem>>, vector<1x64xf32>
    %5 = vector.broadcast %4 : vector<1x64xf32> to vector<128x64xf32>
    %6 = arith.addf %3, %5 : vector<128x64xf32>
    %7 = vector.shape_cast %6 : vector<128x64xf32> to vector<1x128x64xf32>
    %c0_6 = arith.constant 0 : index
    %c0_7 = arith.constant 0 : index
    %c0_8 = arith.constant 0 : index
    %8 = vector.load %arg5[%c0_6, %c0_7, %c0_8] : memref<1x128x64xf32, #tpu.memory_space<vmem>>, vector<1x128x64xf32>
    tpu.vector_store %arg5[%c0_6, %c0_7, %c0_8], %7 {strides = array<i32>} : memref<1x128x64xf32, #tpu.memory_space<vmem>>, vector<1x128x64xf32>,
    return
  }
  func.func @transform_0(%arg0: i32, %arg1: i32) -> (i32, i32, i32) {
    %c0_i32 = arith.constant 0 : i32
    %c0_i32_0 = arith.constant 0 : i32
    return %arg0, %c0_i32, %arg1 : i32, i32, i32
  }
  func.func @transform_1(%arg0: i32, %arg1: i32) -> (i32, i32) {
    %c0_i32 = arith.constant 0 : i32
    %c0_i32_0 = arith.constant 0 : i32
    %c0_i32_1 = arith.constant 0 : i32
    return %c0_i32, %c0_i32_0 : i32, i32
  }
  func.func @transform_2(%arg0: i32, %arg1: i32) -> (i32, i32) {
    %c0_i32 = arith.constant 0 : i32
    %c0_i32_0 = arith.constant 0 : i32
    %c0_i32_1 = arith.constant 0 : i32
    return %c0_i32, %c0_i32_0 : i32, i32
  }
  func.func @transform_3(%arg0: i32, %arg1: i32) -> (i32, i32, i32) {
    %c0_i32 = arith.constant 0 : i32
    %c0_i32_0 = arith.constant 0 : i32
    return %arg0, %arg1, %c0_i32 : i32, i32, i32
  }
}

</mosaic_0001>

<bundles_post_ra>
// kernel: mlp_forward.1
= control target key start
LH: loop header
LB: loop body
LE: loop exit
PB: predicated region body
PF: predicated region fallthrough
CT: control target
= control target key end

     0   :  { %s822_s12 = smov 0   ;;  %s824_s13 = smov 0   ;;  %s977_s0 = inlined_call_operand.vmem [shape: f32[2,32,256], index: 0, kind: input, shape index: {}]   ;;  %s978_s1 = inlined_call_operand.vmem [shape: f32[32,64], index: 1, kind: input, shape index: {}]   ;;  %s979_s2 = inlined_call_operand.vmem [shape: f32[1,64], index: 2, kind: input, shape index: {}]   ;;  %s980_s3 = inlined_call_operand.vmem [shape: f32[2,256,64], index: 3, kind: output, shape index: {}]  }
   0x1   :  { %s826_s14 = smov 0   ;;  %s828_s15 = smov 0  }
   0x2   :  { %s830_s16 = smov 0   ;;  %s832_s17 = smov 0  }
   0x3   :  { %s834_s18 = smov 0  }
   0x4 LB: > { %s22_s19 = sadd.s32 1, %s792_s16  ;;  %s25_s20 = sadd.s32 1, %s796_s17  ;;  %s800_s18 = sphi %s834_s18, %s13_s18   ;;  %s796_s17 = sphi %s832_s17, %s986_s17   ;;  %s792_s16 = sphi %s830_s16, %s985_s16   ;;  %s788_s15 = sphi %s828_s15, %s984_s15   ;;  %s784_s14 = sphi %s826_s14, %s983_s14   ;;  %s780_s13 = sphi %s824_s13, %s982_s13   ;;  %s776_s12 = sphi %s822_s12, %s981_s12  }
   0x5   : > { %p23_p0 = scmp.ge.s32.totalorder %s22_s19, 2  ;;  %p41_p1 = scmp.ne.s32.totalorder %s780_s13, %s776_s12 }
   0x6   : > { %p42_p2 = scmp.eq.s32.totalorder %s800_s18, 0  ;;  %s34_s24 = sadd.s32 1, %s780_s13 }
   0x7   : > { %s988_s19 = smov (%p23_p0, %s22_s19), 0  ;;  %s990_s20 = smov (!%p23_p0, %s25_s20), %s796_s17 }
   0x8   : > { %p43_p3 = por %p42_p2, %p41_p1  ;;  %p27_p4 = scmp.ge.s32.totalorder %s990_s20, 2 }
   0x9   : > { %s30_s21 = ssub.s32 %s792_s16, %s988_s19  ;;  %p597_p6 = scmp.ge.s32.totalorder %s800_s18, 4 }
   0xa   : > { %s992_s20 = smov (%p27_p4, %s990_s20), 0 }
   0xb   : > { %s29_s22 = ssub.s32 %s796_s17, %s992_s20  ;;  %143 = sbr.rel (%p597_p6) target bundleno = 26 (0x1a), region = 24 }
   0xc   : > { %s31_s23 = sor.u32 %s30_s21, %s29_s22 }
   0xd   : > { %p32_p5 = scmp.eq.s32.totalorder %s31_s23, 0 }
   0xf   : > { %s873_s25 = scalar_select %p32_p5, %s780_s13, %s34_s24  }
  0x12   : > { %146 = sbr.rel (!%p43_p3) target bundleno = 26 (0x1a), region = 28  ;;  %s148_s26 = sand.u32 (%p43_p3), 1, %s780_s13  }
  0x13   : > { %s599_s27 = sshll.u32 (%p43_p3), %s796_s17, 3  ;;  %s598_s28 = sshll.u32 (%p43_p3), %s148_s26, 5 }
  0x14   : > { %s152_s29 = sadd.s32 (%p43_p3), %s792_s16, %s599_s27  ;;  %s150_s7 = scalar_lea.vmem (%p43_p3), [#allocation2], %s598_s28 }
  0x15   : > { %s600_s30 = sshll.u32 (%p43_p3), %s152_s29, 3 }
  0x16   : > { %s154_s6 = scalar_lea.vmem (%p43_p3), %s977_s0, %s600_s30 }
  0x17   : > { %v188_v0 = vld [vmem:[%s154_s6] sm:$0xff] (%p43_p3)  ;;  %v190_v1 = vld [vmem:[%s154_s6 + $0x10] sm:$0xff] (%p43_p3) }
  0x18   : > { %v192_v2 = vld [vmem:[%s154_s6 + $0x20] sm:$0xff] (%p43_p3)  ;;  %189 = vst [vmem:[%s150_s7] sm:$0xff] (%p43_p3), %v188_v0  ;;  %191 = vst [vmem:[%s150_s7 + $0x8] sm:$0xff] (%p43_p3), %v190_v1  ;;  %v194_v3 = vld [vmem:[%s154_s6 + $0x30] sm:$0xff] (%p43_p3) }
  0x19   : > { %193 = vst [vmem:[%s150_s7 + $0x10] sm:$0xff] %v192_v2  ;;  %195 = vst [vmem:[%s150_s7 + $0x18] sm:$0xff] %v194_v3 }
  0x1a PF: > { %p601_p7 = scmp.ge.s32.totalorder %s800_s18, 1  ;;  %p200_p8 = scmp.lt.s32.totalorder %s800_s18, 5 }
  0x1c   : > { %p201_p9 = pnand %p601_p7, %p200_p8 }
  0x1d   : > { %s207_s8 = sand.u32 (!%p201_p9), 1, %s776_s12   ;;  %v248_v4 = vld [vmem:[%s978_s1] sm:$0xff] (!%p201_p9)  ;;  %v249_v5 = vld [vmem:[%s978_s1 + $0x8] sm:$0xff] (!%p201_p9)  ;;  %v250_v7 = vld [vmem:[%s978_s1 + $0x10] sm:$0xff] (!%p201_p9)  ;;  %vm291_vm0 = vcmask (!%p201_p9), 261120   ;;  %s603_s12 = sshll.u32 (!%p201_p9), %s784_s14, 4 }
  0x1e   : > { %204 = sbr.rel (%p201_p9) target bundleno = 438 (0x1b6), region = 66  ;;  %s602_s22 = sshll.u32 (!%p201_p9), %s207_s8, 5  ;;  %v677_v6 = vpack.c.bf16 (!%p201_p9), %v249_v5, %v248_v4  ;;  %v251_v8 = vld [vmem:[%s978_s1 + $0x18] sm:$0xff] (!%p201_p9)  ;;  %v606_v30 = vld [vmem:[%s979_s2] ss:$0 sm:$0xff] (!%p201_p9)  ;;  %vm485_vm1 = vcmask (!%p201_p9), 523264  }
  0x1f   : > { %s209_s28 = scalar_lea.vmem (!%p201_p9), [#allocation2], %s602_s22  ;;  %v681_v10 = vpack.c.bf16 (!%p201_p9), %v251_v8, %v250_v7  ;;  %p235_p10 = scmp.lt.s32.totalorder (!%p201_p9), %s788_s15, 1 }
  0x20   : > { %v244_v9 = vld [vmem:[%s209_s28] sm:$0xff] (!%p201_p9)  ;;  %678 = vmatprep.subr.bf16.mxu0 (!%p201_p9), %v677_v6  ;;  %685 = vmatprep.subr.bf16.mxu1 (!%p201_p9), %v677_v6  ;;  %v245_v11 = vld [vmem:[%s209_s28 + $0x8] sm:$0xff] (!%p201_p9)  ;;  %v246_v12 = vld [vmem:[%s209_s28 + $0x10] sm:$0xff] (!%p201_p9)  ;;  %p237_p11 = scmp.lt.s32.totalorder (!%p201_p9), %s603_s12, 31 }
  0x21   : > { %259 = vxpose.xlu0.b32.start [1/4] (short) (!%p201_p9), %v244_v9, 128  ;;  %680 = vmatpush3.bf16.msra.mxu0 (!%p201_p9), %v677_v6  ;;  %v247_v13 = vld [vmem:[%s209_s28 + $0x18] sm:$0xff] (!%p201_p9) }
  0x22   : > { %682 = vmatprep.subr.bf16.mxu0 (!%p201_p9), %v681_v10  ;;  %687 = vmatpush3.bf16.msra.mxu1 (!%p201_p9), %v677_v6 }
  0x23   : > { %686 = vmatprep.subr.bf16.mxu1 (!%p201_p9), %v681_v10 }
  0x25   : > { %260 = vxpose.xlu0.b32.cont [2/4] (short) %v245_v11, 128  ;;  %684 = vmatpush3.bf16.msra.mxu0 %v681_v10  ;;  %s994_s15 = smov (!%p235_p10, %s788_s15), 1  ;;  %s996_s12 = smov (!%p237_p11, %s603_s12), 31 }
  0x26   : > { %688 = vmatpush3.bf16.msra.mxu1 %v681_v10  ;;  %s604_s29 = sshll.u32 %s994_s15, 5 }
  0x27   : > { %s240_s30 = sadd.s32 %s604_s29, %s996_s12 }
  0x28   : > { %s605_s4 = sshll.u32 %s240_s30, 3 }
  0x29   : > { %261 = vxpose.xlu0.b32.cont [3/4] (short) %v246_v12, 128  ;;  %s922_s9 = scalar_lea.vmem %s980_s3, %s605_s4 }
  0x2d   : > { %262 = vxpose.xlu0.b32.end [4/4] (short) %v247_v13, 128 }
  0xa1   : > { %v275_v14 = vpop.trf.xlu0 }
  0xa2   : > { %653 = vmatprep.mubr.msk.f32.mxu0 %vm291_vm0, %v275_v14 }
  0xa5   : > { %v276_v15 = vpop.trf.xlu0 }
  0xa6   : > { %654 = vmatmul.mubr.msk.f32.vlgmr.msra.gmra.mrb[0].mxu0 %vm291_vm0, %v276_v15 }
  0xa9   : > { %v277_v16 = vpop.trf.xlu0 }
  0xaa   : > { %656 = vmatprep.mubr.msk.f32.mxu0 %vm291_vm0, %v277_v16 }
  0xad   : > { %v278_v17 = vpop.trf.xlu0 }
  0xae   : > { %657 = vmatmul.mubr.msk.f32.gmra.mrb[2].mxu0 %vm291_vm0, %v278_v17 }
  0xb1   : > { %v279_v18 = vpop.trf.xlu0 }
  0xb2   : > { %659 = vmatprep.mubr.msk.f32.mxu0 %vm291_vm0, %v279_v18 }
  0xb5   : > { %v280_v19 = vpop.trf.xlu0 }
  0xb6   : > { %660 = vmatmul.mubr.msk.f32.gmra.mrb[4].mxu0 %vm291_vm0, %v280_v19 }
  0xb9   : > { %v281_v20 = vpop.trf.xlu0 }
  0xba   : > { %662 = vmatprep.mubr.msk.f32.mxu0 %vm291_vm0, %v281_v20 }
  0xbd   : > { %v282_v21 = vpop.trf.xlu0 }
  0xbe   : > { %663 = vmatmul.mubr.msk.f32.gmra.mrb[6].mxu0 %vm291_vm0, %v282_v21 }
  0xc1   : > { %v283_v22 = vpop.trf.xlu0 }
  0xc2   : > { %665 = vmatprep.mubr.msk.f32.mxu1 %vm291_vm0, %v283_v22 }
  0xc5   : > { %v284_v23 = vpop.trf.xlu0 }
  0xc6   : > { %666 = vmatmul.mubr.msk.f32.vlgmr.msra.gmra.mrb[0].mxu1 %vm291_vm0, %v284_v23 }
  0xc9   : > { %v285_v24 = vpop.trf.xlu0 }
  0xca   : > { %668 = vmatprep.mubr.msk.f32.mxu1 %vm291_vm0, %v285_v24 }
  0xcd   : > { %v286_v25 = vpop.trf.xlu0 }
  0xce   : > { %669 = vmatmul.mubr.msk.f32.gmra.mrb[2].mxu1 %vm291_vm0, %v286_v25 }
  0xd1   : > { %v287_v26 = vpop.trf.xlu0 }
  0xd2   : > { %671 = vmatprep.mubr.msk.f32.mxu1 %vm291_vm0, %v287_v26 }
  0xd5   : > { %v288_v27 = vpop.trf.xlu0 }
  0xd6   : > { %672 = vmatmul.mubr.msk.f32.gmra.mrb[4].mxu1 %vm291_vm0, %v288_v27 }
  0xd9   : > { %v289_v28 = vpop.trf.xlu0 }
  0xda   : > { %674 = vmatprep.mubr.msk.f32.mxu1 %vm291_vm0, %v289_v28 }
  0xdd   : > { %v290_v29 = vpop.trf.xlu0 }
  0xde   : > { %675 = vmatmul.mubr.msk.f32.gmra.mrb[6].mxu1 %vm291_vm0, %v290_v29 }
 0x179   : > { %v655_v31 = vpop.f32.mrb[0].mxu0 }
 0x17a   : > { %v412_v32 = vadd.f32 %v655_v31, %v606_v30  ;;  %v406_v33 = vpop.f32.mrb[1].mxu0 }
 0x17b   : > { %v407_v34 = vadd.f32 %v606_v30, %v406_v33 }
 0x17c   : > { %487 = vst.msk [vmem:[%s922_s9 + $0x8] sm:$0xff] %vm485_vm1, %v412_v32 }
 0x17d   : > { %486 = vst.msk [vmem:[%s922_s9] sm:$0xff] %vm485_vm1, %v407_v34 }
 0x181   : > { %v658_v35 = vpop.f32.mrb[2].mxu0 }
 0x182   : > { %v422_v36 = vadd.f32 %v658_v35, %v606_v30  ;;  %v416_v37 = vpop.f32.mrb[3].mxu0 }
 0x183   : > { %v417_v38 = vadd.f32 %v606_v30, %v416_v37 }
 0x184   : > { %489 = vst.msk [vmem:[%s922_s9 + $0x18] sm:$0xff] %vm485_vm1, %v422_v36 }
 0x185   : > { %488 = vst.msk [vmem:[%s922_s9 + $0x10] sm:$0xff] %vm485_vm1, %v417_v38 }
 0x189   : > { %v661_v39 = vpop.f32.mrb[4].mxu0 }
 0x18a   : > { %v432_v40 = vadd.f32 %v661_v39, %v606_v30  ;;  %v426_v41 = vpop.f32.mrb[5].mxu0 }
 0x18b   : > { %v427_v42 = vadd.f32 %v606_v30, %v426_v41 }
 0x18c   : > { %491 = vst.msk [vmem:[%s922_s9 + $0x28] sm:$0xff] %vm485_vm1, %v432_v40 }
 0x18d   : > { %490 = vst.msk [vmem:[%s922_s9 + $0x20] sm:$0xff] %vm485_vm1, %v427_v42 }
 0x191   : > { %v664_v43 = vpop.f32.mrb[6].mxu0 }
 0x192   : > { %v442_v44 = vadd.f32 %v664_v43, %v606_v30  ;;  %v436_v45 = vpop.f32.mrb[7].mxu0 }
 0x193   : > { %v437_v46 = vadd.f32 %v606_v30, %v436_v45 }
 0x194   : > { %493 = vst.msk [vmem:[%s922_s9 + $0x38] sm:$0xff] %vm485_vm1, %v442_v44 }
 0x195   : > { %492 = vst.msk [vmem:[%s922_s9 + $0x30] sm:$0xff] %vm485_vm1, %v437_v46 }
 0x199   : > { %v667_v47 = vpop.f32.mrb[0].mxu1 }
 0x19a   : > { %v452_v48 = vadd.f32 %v667_v47, %v606_v30  ;;  %v446_v49 = vpop.f32.mrb[1].mxu1 }
 0x19b   : > { %v447_v50 = vadd.f32 %v606_v30, %v446_v49 }
 0x19c   : > { %495 = vst.msk [vmem:[%s922_s9 + $0x48] sm:$0xff] %vm485_vm1, %v452_v48 }
 0x19d   : > { %494 = vst.msk [vmem:[%s922_s9 + $0x40] sm:$0xff] %vm485_vm1, %v447_v50 }
 0x1a1   : > { %v670_v51 = vpop.f32.mrb[2].mxu1 }
 0x1a2   : > { %v462_v52 = vadd.f32 %v670_v51, %v606_v30  ;;  %v456_v53 = vpop.f32.mrb[3].mxu1 }
 0x1a3   : > { %v457_v54 = vadd.f32 %v606_v30, %v456_v53 }
 0x1a4   : > { %497 = vst.msk [vmem:[%s922_s9 + $0x58] sm:$0xff] %vm485_vm1, %v462_v52 }
 0x1a5   : > { %496 = vst.msk [vmem:[%s922_s9 + $0x50] sm:$0xff] %vm485_vm1, %v457_v54 }
 0x1a9   : > { %v673_v55 = vpop.f32.mrb[4].mxu1 }
 0x1aa   : > { %v472_v56 = vadd.f32 %v673_v55, %v606_v30  ;;  %v466_v57 = vpop.f32.mrb[5].mxu1 }
 0x1ab   : > { %v467_v58 = vadd.f32 %v606_v30, %v466_v57 }
 0x1ac   : > { %499 = vst.msk [vmem:[%s922_s9 + $0x68] sm:$0xff] %vm485_vm1, %v472_v56 }
 0x1ad   : > { %498 = vst.msk [vmem:[%s922_s9 + $0x60] sm:$0xff] %vm485_vm1, %v467_v58 }
 0x1b1   : > { %v676_v59 = vpop.f32.mrb[6].mxu1 }
 0x1b2   : > { %v482_v60 = vadd.f32 %v676_v59, %v606_v30  ;;  %v476_v61 = vpop.f32.mrb[7].mxu1 }
 0x1b3   : > { %v477_v62 = vadd.f32 %v606_v30, %v476_v61 }
 0x1b4   : > { %501 = vst.msk [vmem:[%s922_s9 + $0x78] sm:$0xff] %vm485_vm1, %v482_v60 }
 0x1b5   : > { %500 = vst.msk [vmem:[%s922_s9 + $0x70] sm:$0xff] %vm485_vm1, %v477_v62 }
 0x1b6 PF: > { %s13_s18 = sadd.s32 1, %s800_s18   ;;  %s981_s12 = smov %s780_s13 }
 0x1b7   : > { %p10_p12 = scmp.ge.s32.totalorder %s13_s18, 6   ;;  %s982_s13 = smov %s873_s25 }
 0x1b8   : > { %s983_s14 = smov %s792_s16  ;;  %s984_s15 = smov %s796_s17 }
 0x1b9   : > { %s985_s16 = smov %s988_s19  ;;  %s986_s17 = smov %s992_s20 }
 0x1ba   :  { %12 = sbr.rel (!%p10_p12) target bundleno = 4 (0x4), region = 105 }

</bundles_post_ra>
